<compile_context>
chip_gen: v6e
topology: v6e:2x2x1
jax: 0.10.0
libtpu: 0.0.40
codegen_flags: <defaults>
</compile_context>

<pallas_src>
import functools

import jax
import jax.numpy as jnp
from jax.experimental import pallas as pl
from jax.experimental.pallas import tpu as pltpu

N_DIM = 64
HIDDEN = 128

_INV_SQRT2 = 0.7071067811865476
_NT_DIMS = (((1,), (1,)), ((), ()))  # contract the last dim of both operands


def _gelu(x, approximate):
    if approximate:
        # tanh approximation: transcendental goes to the (otherwise idle) EUP.
        # Does NOT bit-match PyTorch's default exact-erf GELU.
        c = 0.7978845608028654  # sqrt(2/pi)
        return 0.5 * x * (1.0 + jnp.tanh(c * (x + 0.044715 * x * x * x)))
    # PyTorch nn.GELU() default: 0.5 * x * (1 + erf(x / sqrt(2)))
    return 0.5 * x * (1.0 + jax.lax.erf(x * _INV_SQRT2))


def scoring_kernel(x_ref, w1T_ref, b1_ref, w2_ref, b2_ref, o_ref, *, approximate):
    # x_ref  : (tm, N_DIM)      batch tile, natural row-major orientation
    # w1T_ref: (HIDDEN, N_DIM)  first-layer weight, transposed (resident)
    # b1_ref : (HIDDEN, 1)      first-layer bias as a column (resident)
    # w2_ref : (1, HIDDEN)      second-layer weight as a row (resident)
    # b2_ref : (1,) in SMEM     second-layer bias scalar
    # o_ref  : (1, tm)          lane-dense output row
    #
    # "NT" contraction on the MXU: contract the feature dim of both operands,
    # yielding the transposed hidden activation (HIDDEN, tm) with no transpose
    # of x anywhere (neither in the wrapper nor in-kernel).
    hT = jax.lax.dot_general(w1T_ref[...], x_ref[...], _NT_DIMS,
                             preferred_element_type=jnp.float32)      # (HIDDEN, tm)
    hT = _gelu(hT + b1_ref[...], approximate)                          # bias bcast over lanes
    # Second layer (out_features=1) as a (1,128)@(128,tm) MXU matmul: the MXU
    # has plenty of slack after the K=64 first matmul, keeping VALU/XLU free
    # for the GELU.  Mosaic's default f32 MXU path is exact f32 (matches ref
    # within 2e-5 with K=64/128 accumulations).
    y = jnp.dot(w2_ref[...], hT, preferred_element_type=jnp.float32)   # (1, tm)
    o_ref[...] = (y + b2_ref[0]).astype(o_ref.dtype)


def _pick_batch_tile(b_pad, tm_cap):
    """Largest multiple of 128 that divides b_pad, is <= tm_cap, and (when
    possible) keeps the grid at >= 2 steps so the 'parallel' axis can shard
    across both TensorCores on v7x."""
    n_blocks = b_pad // 128
    max_g = max(1, min(tm_cap // 128, n_blocks))
    if n_blocks >= 2:
        max_g = min(max_g, max(1, n_blocks // 2))
    g = 1
    for d in range(max_g, 0, -1):
        if n_blocks % d == 0:
            g = d
            break
    return 128 * g


def scoring_model(x, w1, b1, w2, b2, *, tm=4096, approximate_gelu=False):
    """x: (B, N_DIM) -> (B, 1).

    w1: (N_DIM, HIDDEN), b1: (HIDDEN,), w2: (HIDDEN, 1), b2: (1,)
    (w1/w2 stored as (in_features, out_features), i.e. already transposed vs PyTorch).
    """
    B, D = x.shape
    assert D == N_DIM

    # Pad the batch only up to the next multiple of 128 (<= 127 wasted rows).
    B_pad = pl.cdiv(B, 128) * 128
    xp = x if B_pad == B else jnp.pad(x, ((0, B_pad - B), (0, 0)))

    tm_cap = max(128, (tm // 128) * 128)
    tm_eff = _pick_batch_tile(B_pad, tm_cap)
    grid = (B_pad // tm_eff,)

    w1T = w1.T                        # (HIDDEN, N_DIM) — 32 KiB, one-time, resident
    b1_col = b1.reshape(HIDDEN, 1)
    w2_row = w2.reshape(1, HIDDEN)
    b2_s = b2.reshape(1)

    kernel = functools.partial(scoring_kernel, approximate=approximate_gelu)

    out = pl.pallas_call(
        kernel,
        out_shape=jax.ShapeDtypeStruct((1, B_pad), x.dtype),
        grid_spec=pltpu.PrefetchScalarGridSpec(
            num_scalar_prefetch=0,
            grid=grid,
            in_specs=[
                pl.BlockSpec((tm_eff, N_DIM), lambda i: (i, 0)),      # x tile (no transpose)
                pl.BlockSpec((HIDDEN, N_DIM), lambda i: (0, 0)),      # W1^T (resident)
                pl.BlockSpec((HIDDEN, 1), lambda i: (0, 0)),          # b1 column
                pl.BlockSpec((1, HIDDEN), lambda i: (0, 0)),          # w2 row
                pl.BlockSpec(memory_space=pltpu.MemorySpace.SMEM),    # b2 scalar (1-D)
            ],
            out_specs=pl.BlockSpec((1, tm_eff), lambda i: (0, i)),
        ),
        compiler_params=pltpu.CompilerParams(
            dimension_semantics=("parallel",)),
    )(xp, w1T, b1_col, w2_row, b2_s)

    return out[0, :B].reshape(B, 1)


def scoring_model_ref(x, w1, b1, w2, b2):
    h = jnp.dot(x, w1, precision=jax.lax.Precision.HIGHEST) + b1
    h = 0.5 * h * (1.0 + jax.lax.erf(h * _INV_SQRT2))
    return jnp.dot(h, w2, precision=jax.lax.Precision.HIGHEST) + b2


if __name__ == "__main__":
    key = jax.random.PRNGKey(0)
    k_x, k_w1, k_b1, k_w2, k_b2 = jax.random.split(key, 5)

    B = 16
    x = jax.random.normal(k_x, (B, N_DIM), dtype=jnp.float32)

    # Deterministic parameter init (mimics nn.Linear uniform(-1/sqrt(fan_in), +))
    lim1 = 1.0 / jnp.sqrt(float(N_DIM))
    lim2 = 1.0 / jnp.sqrt(float(HIDDEN))
    w1 = jax.random.uniform(k_w1, (N_DIM, HIDDEN), jnp.float32, -lim1, lim1)
    b1 = jax.random.uniform(k_b1, (HIDDEN,), jnp.float32, -lim1, lim1)
    w2 = jax.random.uniform(k_w2, (HIDDEN, 1), jnp.float32, -lim2, lim2)
    b2 = jax.random.uniform(k_b2, (1,), jnp.float32, -lim2, lim2)

    out = scoring_model(x, w1, b1, w2, b2)
    out = jax.block_until_ready(out)

    ref = scoring_model_ref(x, w1, b1, w2, b2)
    assert out.shape == (B, 1)
    assert jnp.allclose(out, ref, atol=2e-5, rtol=2e-5), float(jnp.max(jnp.abs(out - ref)))

    print("KERNEL_OK")
</pallas_src>

<mosaic_0001>
module attributes {stable_mosaic.version = 11 : i64} {
  func.func @scoring_kernel(%arg0: i32, %arg1: memref<128x64xf32, #tpu.memory_space<vmem>>, %arg2: memref<128x64xf32, #tpu.memory_space<vmem>>, %arg3: memref<128x1xf32, #tpu.memory_space<vmem>>, %arg4: memref<1x128xf32, #tpu.memory_space<vmem>>, %arg5: memref<1xf32, #tpu.memory_space<smem>>, %arg6: memref<1x128xf32, #tpu.memory_space<vmem>>) attributes {dimension_semantics = [#tpu.dimension_semantics<parallel>], iteration_bounds = array<i64: 1>, scalar_prefetch = 0 : i64, scratch_operands = 0 : i64, tpu.core_type = #tpu.core_type<tc>, window_params = [{transform_indices = @transform_0, window_bounds = array<i64: 128, 64>}, {pipeline_mode = #tpu.pipeline_mode<synchronous>, transform_indices = @transform_1, window_bounds = array<i64: 128, 64>}, {pipeline_mode = #tpu.pipeline_mode<synchronous>, transform_indices = @transform_2, window_bounds = array<i64: 128, 1>}, {pipeline_mode = #tpu.pipeline_mode<synchronous>, transform_indices = @transform_3, window_bounds = array<i64: 1, 128>}, {transform_indices = @transform_4, window_bounds = array<i64: 1>}, {transform_indices = @transform_5, window_bounds = array<i64: 1, 128>}]} {
    %c0 = arith.constant 0 : index
    %c0_0 = arith.constant 0 : index
    %0 = vector.load %arg2[%c0, %c0_0] : memref<128x64xf32, #tpu.memory_space<vmem>>, vector<128x64xf32>
    %c0_1 = arith.constant 0 : index
    %c0_2 = arith.constant 0 : index
    %1 = vector.load %arg1[%c0_1, %c0_2] : memref<128x64xf32, #tpu.memory_space<vmem>>, vector<128x64xf32>
    %cst = arith.constant dense<0.000000e+00> : vector<128x128xf32>
    %2 = tpu.matmul %0, %1, %cst {dimension_numbers = #tpu.dot_dimension_numbers<[1], [1], [0], [0], [0, 0, 1, 0], [], []>} : vector<128x64xf32>, vector<128x64xf32>, vector<128x128xf32> -> vector<128x128xf32>
    %c0_3 = arith.constant 0 : index
    %c0_4 = arith.constant 0 : index
    %3 = vector.load %arg3[%c0_3, %c0_4] : memref<128x1xf32, #tpu.memory_space<vmem>>, vector<128x1xf32>
    %4 = vector.broadcast %3 : vector<128x1xf32> to vector<128x128xf32>
    %5 = arith.addf %2, %4 : vector<128x128xf32>
    %cst_5 = arith.constant 5.000000e-01 : f32
    %6 = vector.broadcast %cst_5 : f32 to vector<128x128xf32>
    %7 = arith.mulf %6, %5 : vector<128x128xf32>
    %cst_6 = arith.constant 0.707106769 : f32
    %8 = vector.broadcast %cst_6 : f32 to vector<128x128xf32>
    %9 = arith.mulf %5, %8 : vector<128x128xf32>
    %10 = math.erf %9 : vector<128x128xf32>
    %cst_7 = arith.constant 1.000000e+00 : f32
    %11 = vector.broadcast %cst_7 : f32 to vector<128x128xf32>
    %12 = arith.addf %11, %10 : vector<128x128xf32>
    %13 = arith.mulf %7, %12 : vector<128x128xf32>
    %c0_8 = arith.constant 0 : index
    %c0_9 = arith.constant 0 : index
    %14 = vector.load %arg4[%c0_8, %c0_9] : memref<1x128xf32, #tpu.memory_space<vmem>>, vector<1x128xf32>
    %cst_10 = arith.constant dense<0.000000e+00> : vector<1x128xf32>
    %15 = tpu.matmul %14, %13, %cst_10 {dimension_numbers = #tpu.dot_dimension_numbers<[1], [0], [0], [1], [0, 0, 1, 1], [], []>} : vector<1x128xf32>, vector<128x128xf32>, vector<1x128xf32> -> vector<1x128xf32>
    %c0_11 = arith.constant 0 : index
    %16 = memref.load %arg5[%c0_11] : memref<1xf32, #tpu.memory_space<smem>>
    %17 = vector.broadcast %16 : f32 to vector<1x128xf32>
    %18 = arith.addf %15, %17 : vector<1x128xf32>
    %c0_12 = arith.constant 0 : index
    %c0_13 = arith.constant 0 : index
    %19 = vector.load %arg6[%c0_12, %c0_13] : memref<1x128xf32, #tpu.memory_space<vmem>>, vector<1x128xf32>
    tpu.vector_store %arg6[%c0_12, %c0_13], %18 {strides = array<i32>} : memref<1x128xf32, #tpu.memory_space<vmem>>, vector<1x128xf32>,
    return
  }
  func.func @transform_0(%arg0: i32) -> (i32, i32) {
    %c0_i32 = arith.constant 0 : i32
    %c0_i32_0 = arith.constant 0 : i32
    return %arg0, %c0_i32 : i32, i32
  }
  func.func @transform_1(%arg0: i32) -> (i32, i32) {
    %c0_i32 = arith.constant 0 : i32
    %c0_i32_0 = arith.constant 0 : i32
    %c0_i32_1 = arith.constant 0 : i32
    return %c0_i32, %c0_i32_0 : i32, i32
  }
  func.func @transform_2(%arg0: i32) -> (i32, i32) {
    %c0_i32 = arith.constant 0 : i32
    %c0_i32_0 = arith.constant 0 : i32
    %c0_i32_1 = arith.constant 0 : i32
    return %c0_i32, %c0_i32_0 : i32, i32
  }
  func.func @transform_3(%arg0: i32) -> (i32, i32) {
    %c0_i32 = arith.constant 0 : i32
    %c0_i32_0 = arith.constant 0 : i32
    %c0_i32_1 = arith.constant 0 : i32
    return %c0_i32, %c0_i32_0 : i32, i32
  }
  func.func @transform_4(%arg0: i32) -> i32 {
    %c0_i32 = arith.constant 0 : i32
    %c0_i32_0 = arith.constant 0 : i32
    return %c0_i32 : i32
  }
  func.func @transform_5(%arg0: i32) -> (i32, i32) {
    %c0_i32 = arith.constant 0 : i32
    %c0_i32_0 = arith.constant 0 : i32
    return %c0_i32, %arg0 : i32, i32
  }
}

</mosaic_0001>

<bundles_post_ra>
// kernel: tpu_custom_call.1
= control target key start
LH: loop header
LB: loop body
LE: loop exit
PB: predicated region body
PF: predicated region fallthrough
CT: control target
= control target key end

     0   :  { %vm150_vm0 = vcmask 523264   ;;  %v792_v2 = vmov 0   ;;  %s1106_s0 = inlined_call_operand.vmem [shape: f32[128,64], index: 0, kind: input, shape index: {}]   ;;  %s1107_s1 = inlined_call_operand.vmem [shape: f32[128,64], index: 1, kind: input, shape index: {}]   ;;  %s1108_s2 = inlined_call_operand.vmem [shape: f32[128,1], index: 2, kind: input, shape index: {}]   ;;  %s1109_s3 = inlined_call_operand.vmem [shape: f32[1,128], index: 3, kind: input, shape index: {}]   ;;  %s1110_s4 = inlined_call_operand.<no memory space> [shape: f32[1], index: 4, kind: input, shape index: {}]   ;;  %s1111_s5 = inlined_call_operand.hbm [shape: f32[1,128], index: 5, kind: output, shape index: {}]  }
   0x1   :  { %v53_v0 = vld [vmem:[%s1106_s0 + $0x78] sm:$0xff]  ;;  %v52_v1 = vld [vmem:[%s1106_s0 + $0x70] sm:$0xff]  ;;  %736 = vset.pattern.permute.xlu0 %v792_v2  ;;  %737 = vset.pattern.permute.xlu1 %v792_v2  ;;  %v51_v3 = vld [vmem:[%s1106_s0 + $0x68] sm:$0xff] }
   0x2   :  { %641 = vmatprep.subr.msk.mxu0 %vm150_vm0, %v53_v0  ;;  %v22_v4 = vld [vmem:[%s1107_s1] sm:$0xff]  ;;  %v69_v6 = vld [vmem:[%s1108_s2 + $0x78] sm:$0xff]  ;;  %v67_v7 = vld [vmem:[%s1108_s2 + $0x68] sm:$0xff] }
   0x3   :  { %642 = vmatpush3.xpose.msk.msra.mxu0 %vm150_vm0, %v53_v0  ;;  %673 = vmatprep.mubr.msk.f32.mxu0 %vm150_vm0, %v22_v4  ;;  %v50_v5 = vld [vmem:[%s1106_s0 + $0x60] sm:$0xff]  ;;  %v49_v8 = vld [vmem:[%s1106_s0 + $0x58] sm:$0xff]  ;;  %v68_v9 = vld [vmem:[%s1108_s2 + $0x70] sm:$0xff] }
   0x4   :  { %643 = vmatprep.subr.msk.mxu0 %vm150_vm0, %v52_v1  ;;  %147 = vperm.xlu0 %736, %v69_v6   ;;  %v66_v10 = vld [vmem:[%s1108_s2 + $0x60] sm:$0xff]  ;;  %v48_v11 = vld [vmem:[%s1106_s0 + $0x50] sm:$0xff]  ;;  %v65_v12 = vld [vmem:[%s1108_s2 + $0x58] sm:$0xff] }
   0x5   :  { %137 = vperm.xlu1 %737, %v67_v7  }
   0x7   :  { %644 = vmatpush3.xpose.msk.msra.mxu0 %vm150_vm0, %v52_v1 }
   0x8   :  { %645 = vmatprep.subr.msk.mxu0 %vm150_vm0, %v51_v3  ;;  %142 = vperm.xlu0 %736, %v68_v9  }
   0x9   :  { %132 = vperm.xlu1 %737, %v66_v10  }
   0xb   :  { %646 = vmatpush3.xpose.msk.msra.mxu0 %vm150_vm0, %v51_v3 }
   0xc   :  { %647 = vmatprep.subr.msk.mxu0 %vm150_vm0, %v50_v5 }
   0xf   :  { %648 = vmatpush3.xpose.msk.msra.mxu0 %vm150_vm0, %v50_v5 }
  0x10   :  { %649 = vmatprep.subr.msk.mxu0 %vm150_vm0, %v49_v8 }
  0x11   :  { %11 = vsyncpa [#allocation4], 0  ;;  %v64_v13 = vld [vmem:[%s1108_s2 + $0x50] sm:$0xff]  ;;  %127 = vperm.xlu0 %736, %v65_v12   ;;  %v47_v14 = vld [vmem:[%s1106_s0 + $0x48] sm:$0xff]  ;;  %v793_v49 = vmov 0.0   ;;  %vm794_vm1 = vmmov 0  }
  0x12   :  { %122 = vperm.xlu1 %737, %v64_v13   ;;  %v63_v15 = vld [vmem:[%s1108_s2 + $0x48] sm:$0xff]  ;;  %v62_v16 = vld [vmem:[%s1108_s2 + $0x40] sm:$0xff]  ;;  %v61_v18 = vld [vmem:[%s1108_s2 + $0x38] sm:$0xff]  ;;  %697 = vmatprep.subr.mxu1 %v793_v49  ;;  %s795_s13 = smov [#allocation3]  }
  0x13   :  { %650 = vmatpush3.xpose.msk.msra.mxu0 %vm150_vm0, %v49_v8  ;;  %v46_v17 = vld [vmem:[%s1106_s0 + $0x40] sm:$0xff]  ;;  %v60_v19 = vld [vmem:[%s1108_s2 + $0x30] sm:$0xff]  ;;  %v45_v20 = vld [vmem:[%s1106_s0 + $0x38] sm:$0xff]  ;;  %729 = vmatprep.mubr.msk.f32.mxu1 %vm794_vm1, %v793_v49  ;;  %s552_s14 = sshll.u32 %s795_s13, 4  ;;  %s553_s14 = int_to_ptr.vmem [resolvable:$true] %s552_s14 }
  0x14   :  { %651 = vmatprep.subr.msk.mxu0 %vm150_vm0, %v48_v11  ;;  %v59_v21 = vld [vmem:[%s1108_s2 + $0x28] sm:$0xff]  ;;  %v58_v22 = vld [vmem:[%s1108_s2 + $0x20] sm:$0xff]  ;;  %v44_v23 = vld [vmem:[%s1106_s0 + $0x30] sm:$0xff]  ;;  %s770_s15 = scalar_lea.vmem %s553_s14, 16  ;;  %s774_s16 = scalar_lea.vmem %s553_s14, 32 }
  0x15   :  { %117 = vperm.xlu0 %736, %v63_v15   ;;  %v57_v24 = vld [vmem:[%s1108_s2 + $0x18] sm:$0xff]  ;;  %v56_v25 = vld [vmem:[%s1108_s2 + $0x10] sm:$0xff]  ;;  %v43_v26 = vld [vmem:[%s1106_s0 + $0x28] sm:$0xff]  ;;  %p771_p0 = scmp.ne.s32.totalorder %s553_s14, %s770_s15  ;;  %p775_p1 = scmp.lt.s32.totalorder %s553_s14, %s553_s14 }
  0x16   :  { %112 = vperm.xlu1 %737, %v62_v16   ;;  %v55_v27 = vld [vmem:[%s1108_s2 + $0x8] sm:$0xff]  ;;  %v54_v28 = vld [vmem:[%s1108_s2] sm:$0xff]  ;;  %v41_v30 = vld [vmem:[%s1106_s0 + $0x18] sm:$0xff]  ;;  %p776_p2 = scmp.lt.s32.totalorder %s774_s16, %s770_s15 }
  0x17   :  { %652 = vmatpush3.xpose.msk.msra.mxu0 %vm150_vm0, %v48_v11  ;;  %v42_v29 = vld [vmem:[%s1106_s0 + $0x20] sm:$0xff]  ;;  %v40_v31 = vld [vmem:[%s1106_s0 + $0x10] sm:$0xff]  ;;  %v39_v32 = vld [vmem:[%s1106_s0 + $0x8] sm:$0xff] }
  0x18   :  { %653 = vmatprep.subr.msk.mxu0 %vm150_vm0, %v47_v14  ;;  %v38_v33 = vld [vmem:[%s1106_s0] sm:$0xff]  ;;  %v23_v34 = vld [vmem:[%s1107_s1 + $0x8] sm:$0xff]  ;;  %v24_v35 = vld [vmem:[%s1107_s1 + $0x10] sm:$0xff]  ;;  %p777_p3 = por %p776_p2, %p775_p1 }
  0x19   :  { %107 = vperm.xlu0 %736, %v61_v18   ;;  %v25_v36 = vld [vmem:[%s1107_s1 + $0x18] sm:$0xff]  ;;  %v26_v37 = vld [vmem:[%s1107_s1 + $0x20] sm:$0xff]  ;;  %v27_v38 = vld [vmem:[%s1107_s1 + $0x28] sm:$0xff] }
  0x1a   :  { %102 = vperm.xlu1 %737, %v60_v19   ;;  %v28_v39 = vld [vmem:[%s1107_s1 + $0x30] sm:$0xff]  ;;  %v29_v40 = vld [vmem:[%s1107_s1 + $0x38] sm:$0xff]  ;;  %v30_v41 = vld [vmem:[%s1107_s1 + $0x40] sm:$0xff]  ;;  %p778_p4 = pnand %p777_p3, %p771_p0 }
  0x1b   :  { %654 = vmatpush3.xpose.msk.msra.mxu0 %vm150_vm0, %v47_v14  ;;  %v31_v42 = vld [vmem:[%s1107_s1 + $0x48] sm:$0xff]  ;;  %v32_v43 = vld [vmem:[%s1107_s1 + $0x50] sm:$0xff]  ;;  %v33_v44 = vld [vmem:[%s1107_s1 + $0x58] sm:$0xff] }
  0x1c   :  { %655 = vmatprep.subr.msk.mxu0 %vm150_vm0, %v46_v17  ;;  %v34_v45 = vld [vmem:[%s1107_s1 + $0x60] sm:$0xff]  ;;  %v35_v46 = vld [vmem:[%s1107_s1 + $0x68] sm:$0xff]  ;;  %v36_v47 = vld [vmem:[%s1107_s1 + $0x70] sm:$0xff] }
  0x1d   :  { %97 = vperm.xlu0 %736, %v59_v21   ;;  %v37_v48 = vld [vmem:[%s1107_s1 + $0x78] sm:$0xff] }
  0x1e   :  { %92 = vperm.xlu1 %737, %v58_v22  }
  0x1f   :  { %656 = vmatpush3.xpose.msk.msra.mxu0 %vm150_vm0, %v46_v17 }
  0x20   :  { %657 = vmatprep.subr.msk.mxu0 %vm150_vm0, %v45_v20 }
  0x21   :  { %87 = vperm.xlu0 %736, %v57_v24  }
  0x22   :  { %82 = vperm.xlu1 %737, %v56_v25  }
  0x23   :  { %658 = vmatpush3.xpose.msk.msra.mxu0 %vm150_vm0, %v45_v20 }
  0x24   :  { %659 = vmatprep.subr.msk.mxu0 %vm150_vm0, %v44_v23 }
  0x25   :  { %77 = vperm.xlu0 %736, %v55_v27  }
  0x26   :  { %72 = vperm.xlu1 %737, %v54_v28  }
  0x27   :  { %660 = vmatpush3.xpose.msk.msra.mxu0 %vm150_vm0, %v44_v23 }
  0x28   :  { %661 = vmatprep.subr.msk.mxu0 %vm150_vm0, %v43_v26 }
  0x2b   :  { %662 = vmatpush3.xpose.msk.msra.mxu0 %vm150_vm0, %v43_v26 }
  0x2c   :  { %663 = vmatprep.subr.msk.mxu0 %vm150_vm0, %v42_v29 }
  0x2f   :  { %664 = vmatpush3.xpose.msk.msra.mxu0 %vm150_vm0, %v42_v29 }
  0x30   :  { %665 = vmatprep.subr.msk.mxu0 %vm150_vm0, %v41_v30 }
  0x33   :  { %666 = vmatpush3.xpose.msk.msra.mxu0 %vm150_vm0, %v41_v30 }
  0x34   :  { %667 = vmatprep.subr.msk.mxu0 %vm150_vm0, %v40_v31 }
  0x37   :  { %668 = vmatpush3.xpose.msk.msra.mxu0 %vm150_vm0, %v40_v31 }
  0x38   :  { %669 = vmatprep.subr.msk.mxu0 %vm150_vm0, %v39_v32 }
  0x3b   :  { %670 = vmatpush3.xpose.msk.msra.mxu0 %vm150_vm0, %v39_v32 }
  0x3c   :  { %671 = vmatprep.subr.msk.mxu0 %vm150_vm0, %v38_v33 }
  0x3f   :  { %672 = vmatpush3.xpose.msk.msra.mxu0 %vm150_vm0, %v38_v33 }
  0x42   :  { %674 = vmatmul.mubr.msk.f32.vlgmr.msra.gmra.mxu0 %vm150_vm0, %v23_v34 }
  0x43   :  { %676 = vmatprep.mubr.msk.f32.mxu0 %vm150_vm0, %v24_v35 }
  0x46   :  { %677 = vmatmul.mubr.msk.f32.gmra.mxu0 %vm150_vm0, %v25_v36 }
  0x47   :  { %679 = vmatprep.mubr.msk.f32.mxu0 %vm150_vm0, %v26_v37 }
  0x4a   :  { %680 = vmatmul.mubr.msk.f32.gmra.mxu0 %vm150_vm0, %v27_v38 }
  0x4b   :  { %682 = vmatprep.mubr.msk.f32.mxu0 %vm150_vm0, %v28_v39 }
  0x4e   :  { %683 = vmatmul.mubr.msk.f32.gmra.mxu0 %vm150_vm0, %v29_v40 }
  0x4f   :  { %685 = vmatprep.mubr.msk.f32.mxu0 %vm150_vm0, %v30_v41 }
  0x52   :  { %686 = vmatmul.mubr.msk.f32.gmra.mxu0 %vm150_vm0, %v31_v42 }
  0x53   :  { %688 = vmatprep.mubr.msk.f32.mxu0 %vm150_vm0, %v32_v43 }
  0x56   :  { %689 = vmatmul.mubr.msk.f32.gmra.mxu0 %vm150_vm0, %v33_v44 }
  0x57   :  { %691 = vmatprep.mubr.msk.f32.mxu0 %vm150_vm0, %v34_v45 }
  0x5a   :  { %692 = vmatmul.mubr.msk.f32.gmra.mxu0 %vm150_vm0, %v35_v46 }
  0x5b   :  { %694 = vmatprep.mubr.msk.f32.mxu0 %vm150_vm0, %v36_v47 }
  0x5e   :  { %695 = vmatmul.mubr.msk.f32.gmra.mxu0 %vm150_vm0, %v37_v48 }
  0x7f   :  { %v148_v52 = vpop.permute.xlu0 %147 }
  0x80   :  { %v138_v54 = vpop.permute.xlu1 %137 }
  0x83   :  { %v143_v57 = vpop.permute.xlu0 %142 }
  0x84   :  { %v133_v59 = vpop.permute.xlu1 %132 }
  0x8c   :  { %v128_v62 = vpop.permute.xlu0 %127 }
  0x8d   :  { %v123_v0 = vpop.permute.xlu1 %122 }
  0x90   :  { %v118_v3 = vpop.permute.xlu0 %117 }
  0x91   :  { %v113_v5 = vpop.permute.xlu1 %112 }
  0x94   :  { %v108_v9 = vpop.permute.xlu0 %107 }
  0x95   :  { %v103_v13 = vpop.permute.xlu1 %102 }
  0x98   :  { %v98_v21 = vpop.permute.xlu0 %97 }
  0x99   :  { %v93_v25 = vpop.permute.xlu1 %92 }
  0x9c   :  { %v88_v30 = vpop.permute.xlu0 %87 }
  0x9d   :  { %v83_v34 = vpop.permute.xlu1 %82 }
  0xa0   :  { %v78_v41 = vpop.permute.xlu0 %77 }
  0xa1   :  { %v73_v45 = vpop.permute.xlu1 %72 }
 0x102   :  { %v1020_v50 = vpop.f32.mrf.mxu0 }
 0x104   :  { %v1022_v51 = vpop.f32.mrf.mxu0 }
 0x106   :  { %v678_v53 = vpop.f32.mrf.mxu0 }
 0x107   :  { %v1052_v38 = vadd.f32 %v678_v53, %v88_v30 }
 0x108   :  { %v323_v55 = vpop.f32.mrf.mxu0 }
 0x109   :  { %v1055_v43 = vadd.f32 %v323_v55, %v83_v34  ;;  %v411_v53 = vmul.f32 0.70710677, %v1052_v38 }
 0x10a   :  { %v681_v56 = vpop.f32.mrf.mxu0 }
 0x10b   :  { %v1046_v33 = vadd.f32 %v681_v56, %v98_v21 }
 0x10c   :  { %v333_v58 = vpop.f32.mrf.mxu0 }
 0x10d   :  { %v1049_v36 = vadd.f32 %v333_v58, %v93_v25  ;;  %v413_v39 = vmul.f32 0.70710677, %v1046_v33 }
 0x10e   :  { %v684_v60 = vpop.f32.mrf.mxu0 }
 0x10f   :  { %v1040_v28 = vadd.f32 %v684_v60, %v108_v9  ;;  %v412_v46 = vmul.f32 0.70710677, %v1049_v36  ;;  %v1063_v60 = vadd.f32 %v1022_v51, %v73_v45  ;;  %v394_v45 = vmul.f32 0.5, %v1055_v43 }
 0x110   :  { %v343_v61 = vpop.f32.mrf.mxu0 }
 0x111   :  { %v1043_v31 = vadd.f32 %v343_v61, %v103_v13  ;;  %v415_v35 = vmul.f32 0.70710677, %v1040_v28  ;;  %v410_v61 = vmul.f32 0.70710677, %v1055_v43 }
 0x112   :  { %v687_v63 = vpop.f32.mrf.mxu0 }
 0x113   :  { %v1034_v22 = vadd.f32 %v687_v63, %v118_v3  ;;  %v414_v37 = vmul.f32 0.70710677, %v1043_v31 }
 0x114   :  { %v353_v1 = vpop.f32.mrf.mxu0 }
 0x115   :  { %v1037_v26 = vadd.f32 %v353_v1, %v113_v5  ;;  %v417_v29 = vmul.f32 0.70710677, %v1034_v22  ;;  %v408_v5 = vmul.f32 0.70710677, %v1063_v60 }
 0x116   :  { %v690_v2 = vpop.f32.mrf.mxu0 }
 0x117   :  { %v1029_v14 = vadd.f32 %v690_v2, %v128_v62  ;;  %v416_v32 = vmul.f32 0.70710677, %v1037_v26 }
 0x118   :  { %v363_v4 = vpop.f32.mrf.mxu0 }
 0x119   :  { %v1032_v18 = vadd.f32 %v363_v4, %v123_v0  ;;  %v419_v23 = vmul.f32 0.70710677, %v1029_v14 }
 0x11a   :  { %v693_v6 = vpop.f32.mrf.mxu0 }
 0x11b   :  { %v1024_v7 = vadd.f32 %v693_v6, %v138_v54  ;;  %v418_v27 = vmul.f32 0.70710677, %v1032_v18  ;;  %v1059_v54 = vadd.f32 %v1020_v50, %v78_v41  ;;  %v403_v6 = vmul.f32 0.5, %v1029_v14 }
 0x11c   :  { %v373_v8 = vpop.f32.mrf.mxu0  ;;  %v395_v41 = vmul.f32 0.5, %v1052_v38  ;;  %v392_v38 = vmul.f32 0.5, %v1063_v60 }
 0x11d   :  { %v1026_v10 = vadd.f32 %v373_v8, %v133_v59  ;;  %v421_v11 = vmul.f32 0.70710677, %v1024_v7  ;;  %v405_v62 = vmul.f32 0.5, %v1024_v7  ;;  %v409_v1 = vmul.f32 0.70710677, %v1059_v54 }
 0x11e   :  { %v696_v12 = vpop.f32.mrf.mxu0 }
 0x11f   :  { %v389_v15 = vadd.f32 %v696_v12, %v148_v52  ;;  %v420_v16 = vmul.f32 0.70710677, %v1026_v10  ;;  %738 = verf.f32 %v421_v11  ;;  %v404_v2 = vmul.f32 0.5, %v1026_v10 }
 0x120   :  { %v383_v17 = vpop.f32.mrf.mxu0  ;;  %v402_v10 = vmul.f32 0.5, %v1032_v18 }
 0x121   :  { %v423_v19 = vmul.f32 0.70710677, %v389_v15  ;;  %v384_v20 = vadd.f32 %v383_v17, %v143_v57  ;;  %v407_v47 = vmul.f32 0.5, %v389_v15  ;;  %v401_v15 = vmul.f32 0.5, %v1034_v22 }
 0x123   :  { %740 = verf.f32 %v423_v19  ;;  %v422_v24 = vmul.f32 0.70710677, %v384_v20  ;;  %v406_v56 = vmul.f32 0.5, %v384_v20  ;;  %v400_v20 = vmul.f32 0.5, %v1037_v26 }
 0x124   :  { %742 = verf.f32 %v420_v16  ;;  %v397_v26 = vmul.f32 0.5, %v1046_v33 }
 0x125   :  { %744 = verf.f32 %v422_v24 }
 0x126   :  { %746 = verf.f32 %v419_v23  ;;  %v399_v23 = vmul.f32 0.5, %v1040_v28 }
 0x127   :  { %748 = verf.f32 %v418_v27  ;;  %v398_v27 = vmul.f32 0.5, %v1043_v31 }
 0x128   :  { %750 = verf.f32 %v417_v29 }
 0x129   :  { %752 = verf.f32 %v416_v32 }
 0x12a   :  { %754 = verf.f32 %v415_v35 }
 0x12b   :  { %756 = verf.f32 %v414_v37  ;;  %v396_v37 = vmul.f32 0.5, %v1049_v36  ;;  %v393_v36 = vmul.f32 0.5, %v1059_v54  ;;  %v474_v54 = vstv %s1110_s4 }
 0x12c   :  { %v739_v40 = vpop.eup %738  ;;  %758 = verf.f32 %v413_v39 }
 0x12d   :  { %v453_v59 = vadd.f32 1.0, %v739_v40  ;;  %760 = verf.f32 %v412_v46 }
 0x12e   :  { %762 = verf.f32 %v411_v53 }
 0x12f   :  { %v469_v3 = vmul.f32 %v453_v59, %v405_v62  ;;  %764 = verf.f32 %v410_v61 }
 0x130   :  { %v741_v42 = vpop.eup %740  ;;  %766 = verf.f32 %v409_v1 }
 0x131   :  { %v743_v44 = vpop.eup %742  ;;  %v455_v48 = vadd.f32 1.0, %v741_v42  ;;  %768 = verf.f32 %v408_v5 }
 0x132   :  { %v745_v52 = vpop.eup %744  ;;  %v452_v50 = vadd.f32 1.0, %v743_v44 }
 0x133   :  { %v471_v57 = vmul.f32 %v455_v48, %v407_v47  ;;  %v454_v58 = vadd.f32 1.0, %v745_v52  ;;  %v747_v55 = vpop.eup %746 }
 0x134   :  { %v749_v0 = vpop.eup %748  ;;  %v451_v51 = vadd.f32 1.0, %v747_v55  ;;  %v468_v7 = vmul.f32 %v452_v50, %v404_v2 }
 0x135   :  { %698 = vmatpush3.msra.mxu1 %v471_v57  ;;  %v470_v63 = vmul.f32 %v454_v58, %v406_v56  ;;  %v751_v4 = vpop.eup %750  ;;  %v450_v8 = vadd.f32 1.0, %v749_v0  ;;  %v472_v56 = vld [vmem:[%s1109_s3] sm:$0x1] }
 0x136   :  { %699 = vmatprep.subr.mxu1 %v793_v49  ;;  %v753_v9 = vpop.eup %752  ;;  %v467_v11 = vmul.f32 %v451_v51, %v403_v6  ;;  %v449_v12 = vadd.f32 1.0, %v751_v4 }
 0x137   :  { %700 = vmatpush3.msra.mxu1 %v470_v63  ;;  %v755_v13 = vpop.eup %754  ;;  %v466_v14 = vmul.f32 %v450_v8, %v402_v10  ;;  %v448_v16 = vadd.f32 1.0, %v753_v9 }
 0x138   :  { %701 = vmatprep.subr.mxu1 %v793_v49  ;;  %v757_v17 = vpop.eup %756  ;;  %v465_v18 = vmul.f32 %v449_v12, %v401_v15  ;;  %v447_v21 = vadd.f32 1.0, %v755_v13 }
 0x139   :  { %702 = vmatpush3.msra.mxu1 %v469_v3  ;;  %v759_v19 = vpop.eup %758  ;;  %v464_v24 = vmul.f32 %v448_v16, %v400_v20  ;;  %v446_v25 = vadd.f32 1.0, %v757_v17 }
 0x13a   :  { %703 = vmatprep.subr.mxu1 %v793_v49  ;;  %v761_v22 = vpop.eup %760  ;;  %v463_v29 = vmul.f32 %v447_v21, %v399_v23  ;;  %v445_v30 = vadd.f32 1.0, %v759_v19 }
 0x13b   :  { %704 = vmatpush3.msra.mxu1 %v468_v7  ;;  %v763_v32 = vpop.eup %762  ;;  %v462_v34 = vmul.f32 %v446_v25, %v398_v27  ;;  %v444_v35 = vadd.f32 1.0, %v761_v22 }
 0x13c   :  { %705 = vmatprep.subr.mxu1 %v793_v49  ;;  %v765_v28 = vpop.eup %764  ;;  %v461_v39 = vmul.f32 %v445_v30, %v397_v26  ;;  %v443_v40 = vadd.f32 1.0, %v763_v32 }
 0x13d   :  { %706 = vmatpush3.msra.mxu1 %v467_v11  ;;  %v767_v31 = vpop.eup %766  ;;  %v460_v42 = vmul.f32 %v444_v35, %v396_v37  ;;  %v442_v44 = vadd.f32 1.0, %v765_v28 }
 0x13e   :  { %707 = vmatprep.subr.mxu1 %v793_v49  ;;  %v769_v33 = vpop.eup %768  ;;  %v459_v46 = vmul.f32 %v443_v40, %v395_v41  ;;  %v441_v47 = vadd.f32 1.0, %v767_v31 }
 0x13f   :  { %708 = vmatpush3.msra.mxu1 %v466_v14  ;;  %v458_v48 = vmul.f32 %v442_v44, %v394_v45  ;;  %v440_v52 = vadd.f32 1.0, %v769_v33 }
 0x140   :  { %709 = vmatprep.subr.mxu1 %v793_v49  ;;  %v457_v53 = vmul.f32 %v441_v47, %v393_v36 }
 0x141   :  { %710 = vmatpush3.msra.mxu1 %v465_v18  ;;  %v456_v43 = vmul.f32 %v440_v52, %v392_v38 }
 0x142   :  { %711 = vmatprep.subr.mxu1 %v793_v49 }
 0x143   :  { %712 = vmatpush3.msra.mxu1 %v464_v24 }
 0x144   :  { %713 = vmatprep.subr.mxu1 %v793_v49 }
 0x145   :  { %714 = vmatpush3.msra.mxu1 %v463_v29 }
 0x146   :  { %715 = vmatprep.subr.mxu1 %v793_v49 }
 0x147   :  { %716 = vmatpush3.msra.mxu1 %v462_v34 }
 0x148   :  { %717 = vmatprep.subr.mxu1 %v793_v49 }
 0x149   :  { %718 = vmatpush3.msra.mxu1 %v461_v39 }
 0x14a   :  { %719 = vmatprep.subr.mxu1 %v793_v49 }
 0x14b   :  { %720 = vmatpush3.msra.mxu1 %v460_v42 }
 0x14c   :  { %721 = vmatprep.subr.mxu1 %v793_v49 }
 0x14d   :  { %722 = vmatpush3.msra.mxu1 %v459_v46 }
 0x14e   :  { %723 = vmatprep.subr.mxu1 %v793_v49 }
 0x14f   :  { %724 = vmatpush3.msra.mxu1 %v458_v48 }
 0x150   :  { %725 = vmatprep.subr.mxu1 %v793_v49 }
 0x151   :  { %726 = vmatpush3.msra.mxu1 %v457_v53 }
 0x152   :  { %727 = vmatprep.subr.mxu1 %v793_v49 }
 0x153   :  { %728 = vmatpush3.msra.mxu1 %v456_v43 }
 0x154   :  { %730 = vmatmul.mubr.f32.vlgmr.msra.gmra.mxu1 %v472_v56 }
 0x214   :  { %v541_v57 = vpop.f32.mrf.mxu1 }
 0x215   :  { %v542_v58 = vadd.f32 %v541_v57, %v474_v54 }
 0x216   :  { %v731_v59 = vpop.f32.mrf.mxu1 }
 0x217   :  { %545 = vst [vmem:[#allocation3] sm:$0x1] %v542_v58 }
 0x218   :  { %781 = shalt.err (!%p778_p4)
}
 0x219   :  { %555 = dma.vmem_to_hbm [thread:$0]  %s553_s14, 16, %s1111_s5, [#allocation4]  }
 0x21a   :  { %790 = dma.done.wait [#allocation4], 16  }
 0x21b   :  { %791 = vsyncadd [#allocation4], 4294967280 }
 0x21c   :  { %559 = vsyncpa [#allocation4], 1 }

</bundles_post_ra>
